<compile_context>
chip_gen: v6e
topology: v6e:2x2x1
jax: 0.10.0
libtpu: 0.0.40
codegen_flags: <defaults>
</compile_context>

<pallas_src>
import numpy as np
import jax
import jax.numpy as jnp
from jax.experimental import pallas as pl
from jax.experimental.pallas import tpu as pltpu

EPS = float(np.finfo(float).eps)  # matches np.finfo(float).eps in the PyTorch reference

_TARGET_BLOCK_BYTES = 4 * 1024 * 1024  # ~4 MiB per block


def _squash_kernel(x_ref, o_ref):
    # x_ref / o_ref: (tile_g, cap_dim, tile_hw) tile.
    # Capsule vectors live on axis 1 (sublanes); spatial positions are lane-dense.
    x = x_ref[...]
    xf = x.astype(jnp.float32)
    norm_sq = jnp.sum(xf * xf, axis=1, keepdims=True)          # (tile_g, 1, tile_hw) f32
    # paper squash: scale = ||v||^2 / ((1 + ||v||^2) * (||v|| + eps))
    denom = (1.0 + norm_sq) * (jnp.sqrt(norm_sq) + EPS)
    scale = norm_sq / denom                                    # exact divide (hidden under DMA)
    # Multiply in the native dtype: no full-tile f32 copy materialized for sub-32-bit inputs.
    o_ref[...] = x * scale.astype(x.dtype)


def _pick_tiles(G, D, HW, itemsize):
    """Pick (tile_g, tile_hw) targeting ~_TARGET_BLOCK_BYTES per block.

    Prefer keeping HW whole (a (tile_g, D, HW) block of the row-major x3 is one
    contiguous HBM range => single linear DMA) and split G.  Only split HW when a
    single group's row (D*HW) exceeds the budget; then use a 128-lane multiple and
    let Pallas mask the tail block.  cap_dim (D) always stays whole so the norm
    reduction is local to a block.
    """
    row_bytes = D * HW * itemsize
    if row_bytes <= _TARGET_BLOCK_BYTES:
        tile_hw = HW
        tile_g = max(1, min(G, _TARGET_BLOCK_BYTES // row_bytes))
    else:
        tile_g = 1
        max_hw = _TARGET_BLOCK_BYTES // (D * itemsize)
        tile_hw = max(128, (max_hw // 128) * 128)
        tile_hw = min(tile_hw, HW)  # degenerate guard: tiny HW with huge cap_dim
    return tile_g, tile_hw


def _ensure_two_blocks(G, HW, tile_g, tile_hw):
    """v7x has 2 TensorCores: make sure a 'parallel' axis yields >= 2 blocks."""
    if pl.cdiv(G, tile_g) * pl.cdiv(HW, tile_hw) >= 2:
        return tile_g, tile_hw
    if G >= 2:
        return -(-G // 2), tile_hw           # split G: ceil(G/2)
    if HW > 128:
        half_hw = ((-(-HW // 2) + 127) // 128) * 128  # 128-multiple, masked tail OK
        if half_hw < HW:
            return tile_g, half_hw
    return tile_g, tile_hw                   # too small to split legally; single block


def conv_squash(x, num_shared):
    """x: (B, C, H, W) with C = num_shared * cap_dim. Returns (B, C, H, W)."""
    B, C, H, W = x.shape
    assert C % num_shared == 0
    cap_dim = C // num_shared
    G, HW = B * num_shared, H * W

    # Free, contiguous reshape of NCHW -- no data movement, no transposes.
    x3 = x.reshape(G, cap_dim, HW)

    tile_g, tile_hw = _pick_tiles(G, cap_dim, HW, x3.dtype.itemsize)
    tile_g, tile_hw = _ensure_two_blocks(G, HW, tile_g, tile_hw)
    grid = (pl.cdiv(G, tile_g), pl.cdiv(HW, tile_hw))

    # TODO(synk): for bf16/int8 inputs with small cap_dim, a 2-D (G*cap_dim, HW)
    # blocking would avoid half-empty sublanes; f32 with cap_dim=8 is already tight.
    out3 = pl.pallas_call(
        _squash_kernel,
        out_shape=jax.ShapeDtypeStruct((G, cap_dim, HW), x3.dtype),
        grid_spec=pl.GridSpec(
            grid=grid,
            in_specs=[pl.BlockSpec((tile_g, cap_dim, tile_hw),
                                   lambda g, s: (g, 0, s))],
            out_specs=pl.BlockSpec((tile_g, cap_dim, tile_hw),
                                   lambda g, s: (g, 0, s)),
        ),
        compiler_params=pltpu.CompilerParams(
            dimension_semantics=("parallel", "parallel"),
            vmem_limit_bytes=32 * 1024 * 1024,
        ),
    )(x3)

    return out3.reshape(B, C, H, W)


def _reference(x, num_shared):
    """Pure-JAX reference mirroring the PyTorch forward exactly."""
    B, C, H, W = x.shape
    cap_dim = C // num_shared
    v = x.reshape(B, num_shared, cap_dim, H, W)
    v = jnp.transpose(v, (0, 1, 3, 4, 2)).reshape(B, -1, cap_dim)
    norm = jnp.linalg.norm(v, axis=2)
    ns = norm ** 2
    coeff = ns / (1.0 + ns)
    coeff2 = (coeff / (norm + EPS))[..., None]
    v = v * coeff2
    v = v.reshape(B, num_shared, H, W, cap_dim)
    v = jnp.transpose(v, (0, 1, 4, 2, 3)).reshape(B, -1, H, W)
    return v


if __name__ == "__main__":
    # Small shapes consistent with the module: C must be divisible by num_shared.
    B, num_shared, cap_dim, spatial = 2, 4, 8, 16
    C = num_shared * cap_dim  # 32
    key = jax.random.PRNGKey(0)
    x = jax.random.normal(key, (B, C, spatial, spatial), dtype=jnp.float32)

    out = conv_squash(x, num_shared)
    out = jax.block_until_ready(out)

    ref = _reference(x, num_shared)
    # Exact divide in-kernel -> tight tolerance.
    np.testing.assert_allclose(np.asarray(out), np.asarray(ref), rtol=1e-5, atol=1e-6)

    print("KERNEL_OK")
</pallas_src>

<mosaic_0001>
module attributes {stable_mosaic.version = 11 : i64} {
  func.func @_squash_kernel(%arg0: i32, %arg1: i32, %arg2: memref<4x8x256xf32, #tpu.memory_space<vmem>>, %arg3: memref<4x8x256xf32, #tpu.memory_space<vmem>>) attributes {dimension_semantics = [#tpu.dimension_semantics<parallel>, #tpu.dimension_semantics<parallel>], iteration_bounds = array<i64: 2, 1>, scalar_prefetch = 0 : i64, scratch_operands = 0 : i64, tpu.core_type = #tpu.core_type<tc>, window_params = [{transform_indices = @transform_0, window_bounds = array<i64: 4, 8, 256>}, {transform_indices = @transform_1, window_bounds = array<i64: 4, 8, 256>}]} {
    %c0 = arith.constant 0 : index
    %c0_0 = arith.constant 0 : index
    %c0_1 = arith.constant 0 : index
    %0 = vector.load %arg2[%c0, %c0_0, %c0_1] : memref<4x8x256xf32, #tpu.memory_space<vmem>>, vector<4x8x256xf32>
    %1 = arith.mulf %0, %0 : vector<4x8x256xf32>
    %cst = arith.constant dense<0.000000e+00> : vector<4x256xf32>
    %2 = vector.multi_reduction <add>, %1, %cst [1] : vector<4x8x256xf32> to vector<4x256xf32>
    %3 = vector.shape_cast %2 : vector<4x256xf32> to vector<4x1x256xf32>
    %cst_2 = arith.constant 1.000000e+00 : f32
    %4 = vector.broadcast %cst_2 : f32 to vector<4x1x256xf32>
    %5 = arith.addf %4, %3 : vector<4x1x256xf32>
    %6 = math.sqrt %3 : vector<4x1x256xf32>
    %cst_3 = arith.constant 2.22044605E-16 : f32
    %7 = vector.broadcast %cst_3 : f32 to vector<4x1x256xf32>
    %8 = arith.addf %6, %7 : vector<4x1x256xf32>
    %9 = arith.mulf %5, %8 : vector<4x1x256xf32>
    %10 = arith.divf %3, %9 : vector<4x1x256xf32>
    %11 = vector.broadcast %10 : vector<4x1x256xf32> to vector<4x8x256xf32>
    %12 = arith.mulf %0, %11 : vector<4x8x256xf32>
    %c0_4 = arith.constant 0 : index
    %c0_5 = arith.constant 0 : index
    %c0_6 = arith.constant 0 : index
    %13 = vector.load %arg3[%c0_4, %c0_5, %c0_6] : memref<4x8x256xf32, #tpu.memory_space<vmem>>, vector<4x8x256xf32>
    tpu.vector_store %arg3[%c0_4, %c0_5, %c0_6], %12 {strides = array<i32>} : memref<4x8x256xf32, #tpu.memory_space<vmem>>, vector<4x8x256xf32>,
    return
  }
  func.func @transform_0(%arg0: i32, %arg1: i32) -> (i32, i32, i32) {
    %c0_i32 = arith.constant 0 : i32
    %c0_i32_0 = arith.constant 0 : i32
    return %arg0, %c0_i32, %arg1 : i32, i32, i32
  }
  func.func @transform_1(%arg0: i32, %arg1: i32) -> (i32, i32, i32) {
    %c0_i32 = arith.constant 0 : i32
    %c0_i32_0 = arith.constant 0 : i32
    return %arg0, %c0_i32, %arg1 : i32, i32, i32
  }
}

</mosaic_0001>

<bundles_post_ra>
// kernel: tpu_custom_call.1
= control target key start
LH: loop header
LB: loop body
LE: loop exit
PB: predicated region body
PF: predicated region fallthrough
CT: control target
= control target key end

     0   :  { %6 = vsyncpa [#allocation3], 0  ;;  %s985_s0 = inlined_call_operand.hbm [shape: f32[8,8,256], index: 0, kind: input, shape index: {}]   ;;  %s986_s1 = inlined_call_operand.hbm [shape: f32[8,8,256], index: 1, kind: output, shape index: {}]  }
   0x1   :  { %8 = vsyncpa [#allocation3 + $0x1], 0 }
   0x2   :  { %9 = vsyncpa [#allocation4], 0 }
   0x3   :  { %11 = vsyncpa [#allocation4 + $0x1], 0  ;;  %s683_s6 = smov 0   ;;  %s685_s7 = smov 0  }
   0x4   :  { %s687_s8 = smov 0   ;;  %s689_s9 = smov 0  }
   0x5   :  { %s691_s10 = smov 0   ;;  %s693_s11 = smov 0  }
   0x6 LB: > { %s438_s12 = sadd.s32 4294967295, %s665_s11   ;;  %s439_s13 = sadd.s32 4294967294, %s665_s11   ;;  %s665_s11 = sphi %s693_s11, %s17_s11   ;;  %s661_s10 = sphi %s691_s10, %s997_s10   ;;  %s657_s9 = sphi %s689_s9, %s996_s9   ;;  %s653_s8 = sphi %s687_s8, %s995_s8   ;;  %s649_s7 = sphi %s685_s7, %s994_s7   ;;  %s645_s6 = sphi %s683_s6, %s993_s6  }
   0x7   : > { %s29_s14 = sadd.s32 1, %s661_s10  ;;  %s38_s15 = sadd.s32 1, %s653_s8 }
   0x8   : > { %p31_p0 = scmp.ge.s32.totalorder %s29_s14, 2  ;;  %p45_p1 = scmp.ne.s32.totalorder %s653_s8, %s649_s7 }
   0x9   : > { %p46_p2 = scmp.eq.s32.totalorder %s665_s11, 0  ;;  %p51_p3 = scmp.ne.s32.totalorder %s649_s7, %s645_s6 }
   0xa   : > { %s999_s14 = smov (%p31_p0, %s29_s14), 0  ;;  %p52_p5 = scmp.eq.s32.totalorder %s438_s12, 0 }
   0xb   : > { %p724_p4 = por %p46_p2, %p45_p1  ;;  %s33_s17 = ssub.s32 %s661_s10, %s999_s14 }
   0xc   : > { %p77_p6 = scmp.eq.s32.totalorder %s438_s12, 1  ;;  %p36_p7 = scmp.eq.s32.totalorder %s33_s17, 0 }
   0xd   : > { %p730_p8 = por %p52_p5, %p51_p3  ;;  %p83_p10 = scmp.eq.s32.totalorder %s439_s13, 1 }
   0xe   : > { %p734_p9 = por %p77_p6, %p45_p1  ;;  %p471_p13 = scmp.lt.s32.totalorder %s665_s11, 2 }
   0xf   : > { %s739_s20 = scalar_select %p36_p7, %s653_s8, %s38_s15  }
  0x10   : > { %p741_p11 = por %p83_p10, %p51_p3  ;;  %s103_s22 = sand.u32 1, %s653_s8  }
  0x11   : > { %s442_s23 = sshll.u32 %s103_s22, 6  ;;  %s456_s24 = sshll.u32 %s661_s10, 10 }
  0x12   : > { %s116_s27 = scalar_lea.hbm %s985_s0, %s456_s24  ;;  %s107_s28 = scalar_lea.vmem [#allocation2], %s442_s23 }
  0x13   : > { %s117_s29 = sshll.u32 %s107_s28, 4  ;;  %p754_p0 = pnand %p471_p13, %p724_p4  ;;  %s118_s29 = int_to_ptr.vmem [resolvable:$true] %s117_s29 }
  0x14   : > { %p446_p1 = scmp.ge.s32.totalorder %s665_s11, 1  ;;  %s104_s2 = scalar_lea.sflag [#allocation3], %s103_s22 }
  0x15   : > { %p559_p2 = pneg %p754_p0  ;;  %s570_s3 = scalar_lea.vmem %s118_s29, 1024 }
  0x16   : > { %p571_p3 = scmp.ne.s32.totalorder %s118_s29, %s570_s3  ;;  %s667_s4 = smov [#allocation2]  }
  0x17   : > { %s575_s5 = sshll.u32 %s667_s4, 4  ;;  %s576_s5 = int_to_ptr.vmem [resolvable:$false] %s575_s5 }
  0x18   : > { %p573_p5 = pnand %p571_p3, %p559_p2  ;;  %s577_s12 = scalar_lea.vmem %s576_s5, 2048 }
  0x19   : > { %p578_p7 = scmp.lt.s32.totalorder %s118_s29, %s576_s5  ;;  %p579_p10 = scmp.lt.s32.totalorder %s577_s12, %s570_s3 }
  0x1a   : > { %p574_p6 = pneg %p573_p5 }
  0x1b   : > { %p580_p12 = por %p579_p10, %p578_p7 }
  0x1d   : > { %p581_p4 = pnand %p580_p12, %p574_p6 }
  0x1f   : > { %584 = shalt.err (!%p581_p4)
}
  0x20   : > { %s668_s13 = smov 256   ;;  %s669_s15 = smov 16  }
  0x21   : > { %466 = dma.hbm_to_vmem [thread:$0]  (!%p754_p0), %s116_s27, 1024, %s118_s29, %s104_s2, %s668_s13, %s668_s13, %s669_s15  }
  0x22   : > { %p125_p13 = scmp.lt.s32.totalorder %s665_s11, 3 }
  0x24   : > { %p126_p2 = pnand %p446_p1, %p125_p13 }
  0x25   : > { %s767_s16 = sand.u32 (!%p126_p2), 1, %s649_s7  }
  0x26   : > { %129 = sbr.rel (%p126_p2) target bundleno = 123 (0x7b), region = 24  ;;  %s447_s17 = sshll.u32 (!%p126_p2), %s767_s16, 6 }
  0x27   : > { %s132_s22 = scalar_lea.sflag (!%p126_p2), [#allocation3], %s767_s16  ;;  %s135_s23 = scalar_lea.vmem (!%p126_p2), [#allocation2], %s447_s17 }
  0x2b   : > { %636 = dma.done.wait (%p730_p8), %s132_s22, 1024  }
  0x2c   : > { %638 = vsyncadd (%p730_p8), %s132_s22, 4294966272  ;;  %v777_v0 = vld [vmem:[%s135_s23] sm:$0xff]  ;;  %v779_v1 = vld [vmem:[%s135_s23 + $0x8] sm:$0xff]  ;;  %s153_s18 = scalar_lea.vmem [#allocation5], %s447_s17  ;;  %s458_s25 = sshll.u32 %s657_s9, 10 }
  0x2d   : > { %v781_v2 = vld [vmem:[%s135_s23 + $0x10] sm:$0xff]  ;;  %v166_v3 = vmul.f32 %v777_v0, %v777_v0  ;;  %v167_v4 = vmul.f32 %v779_v1, %v779_v1  ;;  %v789_v6 = vld [vmem:[%s135_s23 + $0x18] sm:$0xff]  ;;  %v791_v7 = vld [vmem:[%s135_s23 + $0x20] sm:$0xff]  ;;  %s351_s24 = sshll.u32 %s153_s18, 4  ;;  %s936_s9 = scalar_lea.hbm %s986_s1, %s458_s25  ;;  %s930_s24 = int_to_ptr.vmem [resolvable:$true] %s351_s24 }
  0x2e   : > { %v168_v5 = vmul.f32 %v781_v2, %v781_v2  ;;  %v793_v8 = vld [vmem:[%s135_s23 + $0x28] sm:$0xff]  ;;  %v169_v9 = vmul.f32 %v789_v6, %v789_v6  ;;  %v170_v10 = vmul.f32 %v791_v7, %v791_v7  ;;  %v801_v12 = vld [vmem:[%s135_s23 + $0x30] sm:$0xff]  ;;  %v803_v13 = vld [vmem:[%s135_s23 + $0x38] sm:$0xff]  ;;  %s335_s28 = scalar_lea.sflag [#allocation4], %s767_s16  ;;  %s585_s29 = scalar_lea.vmem %s930_s24, 1024 }
  0x2f   : > { %v171_v11 = vmul.f32 %v793_v8, %v793_v8  ;;  %v174_v14 = vrot.slane %v166_v3, 4  ;;  %v180_v15 = vrot.slane %v167_v4, 4  ;;  %v172_v17 = vmul.f32 %v801_v12, %v801_v12  ;;  %p586_p8 = scmp.ne.s32.totalorder %s930_s24, %s585_s29  ;;  %s670_s30 = smov [#allocation5]  }
  0x30   : > { %v186_v16 = vrot.slane %v168_v5, 4  ;;  %v192_v18 = vrot.slane %v169_v9, 4  ;;  %v198_v19 = vrot.slane %v170_v10, 4  ;;  %v173_v21 = vmul.f32 %v803_v13, %v803_v13  ;;  %s589_s2 = sshll.u32 %s670_s30, 4  ;;  %s590_s2 = int_to_ptr.vmem [resolvable:$false] %s589_s2 }
  0x31   : > { %v204_v20 = vrot.slane %v171_v11, 4  ;;  %v175_v22 = vadd.f32 %v174_v14, %v166_v3  ;;  %v181_v23 = vadd.f32 %v180_v15, %v167_v4  ;;  %v210_v25 = vrot.slane %v172_v17, 4  ;;  %p587_p12 = pnand %p586_p8, %p734_p9  ;;  %s591_s3 = scalar_lea.vmem %s590_s2, 2048 }
  0x32   : > { %v187_v24 = vadd.f32 %v186_v16, %v168_v5  ;;  %v193_v26 = vadd.f32 %v192_v18, %v169_v9  ;;  %v199_v27 = vadd.f32 %v198_v19, %v170_v10  ;;  %v216_v29 = vrot.slane %v173_v21, 4  ;;  %p592_p1 = scmp.lt.s32.totalorder %s930_s24, %s590_s2  ;;  %p593_p3 = scmp.lt.s32.totalorder %s591_s3, %s585_s29 }
  0x33   : > { %v205_v28 = vadd.f32 %v204_v20, %v171_v11  ;;  %v176_v30 = vrot.slane %v175_v22, 2  ;;  %v182_v31 = vrot.slane %v181_v23, 2  ;;  %v211_v33 = vadd.f32 %v210_v25, %v172_v17  ;;  %p588_p0 = pneg %p587_p12 }
  0x34   : > { %v188_v32 = vrot.slane %v187_v24, 2  ;;  %v194_v34 = vrot.slane %v193_v26, 2  ;;  %v200_v35 = vrot.slane %v199_v27, 2  ;;  %v217_v37 = vadd.f32 %v216_v29, %v173_v21  ;;  %p594_p5 = por %p593_p3, %p592_p1 }
  0x35   : > { %v206_v36 = vrot.slane %v205_v28, 2  ;;  %v177_v38 = vadd.f32 %v176_v30, %v175_v22  ;;  %v183_v39 = vadd.f32 %v182_v31, %v181_v23  ;;  %v212_v41 = vrot.slane %v211_v33, 2 }
  0x36   : > { %v189_v40 = vadd.f32 %v188_v32, %v187_v24  ;;  %v195_v42 = vadd.f32 %v194_v34, %v193_v26  ;;  %v201_v43 = vadd.f32 %v200_v35, %v199_v27  ;;  %v218_v45 = vrot.slane %v217_v37, 2  ;;  %p595_p6 = pnand %p594_p5, %p588_p0 }
  0x37   : > { %v207_v44 = vadd.f32 %v206_v36, %v205_v28  ;;  %v178_v46 = vrot.slane %v177_v38, 1  ;;  %v184_v47 = vrot.slane %v183_v39, 1  ;;  %v213_v55 = vadd.f32 %v212_v41, %v211_v33 }
  0x38   : > { %v190_v48 = vrot.slane %v189_v40, 1  ;;  %v196_v49 = vrot.slane %v195_v42, 1  ;;  %v202_v50 = vrot.slane %v201_v43, 1  ;;  %v219_v56 = vadd.f32 %v218_v45, %v217_v37 }
  0x39   : > { %v809_v51 = vadd.f32 %v178_v46, %v177_v38  ;;  %v811_v52 = vadd.f32 %v184_v47, %v183_v39  ;;  %v208_v54 = vrot.slane %v207_v44, 1  ;;  %v214_v60 = vrot.slane %v213_v55, 1 }
  0x3a   : > { %v813_v53 = vadd.f32 %v190_v48, %v189_v40  ;;  %v816_v57 = vadd.f32 %v196_v49, %v195_v42  ;;  %v819_v58 = vadd.f32 %v202_v50, %v201_v43  ;;  %v220_v61 = vrot.slane %v219_v56, 1 }
  0x3b   : > { %525 = vrsqrt.f32 %v809_v51  ;;  %v822_v59 = vadd.f32 %v208_v54, %v207_v44  ;;  %v827_v62 = vadd.f32 %v214_v60, %v213_v55  ;;  %v222_v3 = vadd.f32 1.0, %v809_v51 }
  0x3c   : > { %527 = vrsqrt.f32 %v811_v52  ;;  %v829_v63 = vadd.f32 %v220_v61, %v219_v56  ;;  %vm232_vm0 = vcmp.eq.f32.partialorder %v809_v51, inf  ;;  %vm234_vm1 = vcmp.eq.f32.partialorder %v809_v51, 0.0 }
  0x3d   : > { %529 = vrsqrt.f32 %v813_v53  ;;  %v235_v4 = vand.u32 2147483648, %v809_v51  ;;  %v223_v5 = vadd.f32 1.0, %v811_v52  ;;  %vm239_vm2 = vcmp.eq.f32.partialorder %v811_v52, inf }
  0x3e   : > { %531 = vrsqrt.f32 %v816_v57  ;;  %vm241_vm3 = vcmp.eq.f32.partialorder %v811_v52, 0.0  ;;  %v242_v9 = vand.u32 2147483648, %v811_v52  ;;  %v224_v10 = vadd.f32 1.0, %v813_v53 }
  0x3f   : > { %533 = vrsqrt.f32 %v819_v58  ;;  %vm246_vm4 = vcmp.eq.f32.partialorder %v813_v53, inf  ;;  %vm248_vm5 = vcmp.eq.f32.partialorder %v813_v53, 0.0  ;;  %v249_v11 = vand.u32 2147483648, %v813_v53 }
  0x40   : > { %535 = vrsqrt.f32 %v822_v59  ;;  %v225_v14 = vadd.f32 1.0, %v816_v57  ;;  %vm253_vm6 = vcmp.eq.f32.partialorder %v816_v57, inf  ;;  %vm255_vm7 = vcmp.eq.f32.partialorder %v816_v57, 0.0 }
  0x41   : > { %537 = vrsqrt.f32 %v827_v62  ;;  %v256_v16 = vand.u32 2147483648, %v816_v57  ;;  %v226_v17 = vadd.f32 1.0, %v819_v58  ;;  %vm260_vm8 = vcmp.eq.f32.partialorder %v819_v58, inf }
  0x42   : > { %539 = vrsqrt.f32 %v829_v63  ;;  %vm262_vm9 = vcmp.eq.f32.partialorder %v819_v58, 0.0  ;;  %v263_v20 = vand.u32 2147483648, %v819_v58  ;;  %v227_v21 = vadd.f32 1.0, %v822_v59 }
  0x43   : > { %vm267_vm10 = vcmp.eq.f32.partialorder %v822_v59, inf  ;;  %vm269_vm11 = vcmp.eq.f32.partialorder %v822_v59, 0.0  ;;  %v270_v24 = vand.u32 2147483648, %v822_v59  ;;  %vm274_vm12 = vcmp.eq.f32.partialorder %v827_v62, inf }
  0x44   : > { %vm276_vm13 = vcmp.eq.f32.partialorder %v827_v62, 0.0  ;;  %v277_v30 = vand.u32 2147483648, %v827_v62  ;;  %vm281_vm14 = vcmp.eq.f32.partialorder %v829_v63, inf  ;;  %vm283_vm15 = vcmp.eq.f32.partialorder %v829_v63, 0.0 }
  0x45   : > { %v284_v47 = vand.u32 2147483648, %v829_v63 }
  0x48   : > { %v526_v15 = vpop.eup %525 }
  0x49   : > { %v528_v18 = vpop.eup %527  ;;  %v231_v19 = vmul.f32 %v526_v15, %v809_v51 }
  0x4a   : > { %v530_v22 = vpop.eup %529  ;;  %v238_v23 = vmul.f32 %v528_v18, %v811_v52  ;;  %v229_v18 = vadd.f32 1.0, %v829_v63 }
  0x4b   : > { %v233_v25 = vsel %vm232_vm0, %v809_v51, %v231_v19  ;;  %v245_v26 = vmul.f32 %v530_v22, %v813_v53  ;;  %v532_v27 = vpop.eup %531 }
  0x4c   : > { %v236_v28 = vsel %vm234_vm1, %v235_v4, %v233_v25  ;;  %v240_v29 = vsel %vm239_vm2, %v811_v52, %v238_v23  ;;  %v534_v31 = vpop.eup %533  ;;  %v252_v35 = vmul.f32 %v532_v27, %v816_v57 }
  0x4d   : > { %v286_v32 = vadd.f32 2.220446e-16, %v236_v28  ;;  %v243_v33 = vsel %vm241_vm3, %v242_v9, %v240_v29  ;;  %v247_v34 = vsel %vm246_vm4, %v813_v53, %v245_v26  ;;  %v536_v36 = vpop.eup %535  ;;  %v259_v39 = vmul.f32 %v534_v31, %v819_v58 }
  0x4e   : > { %v287_v37 = vadd.f32 2.220446e-16, %v243_v33  ;;  %v250_v38 = vsel %vm248_vm5, %v249_v11, %v247_v34  ;;  %v254_v42 = vsel %vm253_vm6, %v816_v57, %v252_v35  ;;  %v266_v43 = vmul.f32 %v536_v36, %v822_v59  ;;  %v538_v48 = vpop.eup %537 }
  0x4f   : > { %v294_v40 = vmul.f32 %v286_v32, %v222_v3  ;;  %v288_v41 = vadd.f32 2.220446e-16, %v250_v38  ;;  %v257_v45 = vsel %vm255_vm7, %v256_v16, %v254_v42  ;;  %v261_v46 = vsel %vm260_vm8, %v819_v58, %v259_v39  ;;  %v540_v55 = vpop.eup %539 }
  0x50   : > { %v295_v44 = vmul.f32 %v287_v37, %v223_v5  ;;  %v289_v50 = vadd.f32 2.220446e-16, %v257_v45  ;;  %v264_v54 = vsel %vm262_vm9, %v263_v20, %v261_v46  ;;  %v268_v60 = vsel %vm267_vm10, %v822_v59, %v266_v43 }
  0x51   : > { %541 = vrcp.f32 %v294_v40  ;;  %v296_v49 = vmul.f32 %v288_v41, %v224_v10  ;;  %v290_v56 = vadd.f32 2.220446e-16, %v264_v54  ;;  %v273_v61 = vmul.f32 %v538_v48, %v827_v62 }
  0x52   : > { %543 = vrcp.f32 %v295_v44  ;;  %v297_v3 = vmul.f32 %v289_v50, %v225_v14  ;;  %v271_v4 = vsel %vm269_vm11, %v270_v24, %v268_v60  ;;  %v280_v5 = vmul.f32 %v540_v55, %v829_v63 }
  0x53   : > { %545 = vrcp.f32 %v296_v49  ;;  %v298_v9 = vmul.f32 %v290_v56, %v226_v17  ;;  %v291_v10 = vadd.f32 2.220446e-16, %v271_v4  ;;  %v228_v11 = vadd.f32 1.0, %v827_v62 }
  0x54   : > { %v275_v15 = vsel %vm274_vm12, %v827_v62, %v273_v61  ;;  %547 = vrcp.f32 %v297_v3  ;;  %v282_v14 = vsel %vm281_vm14, %v829_v63, %v280_v5 }
  0x55   : > { %v278_v16 = vsel %vm276_vm13, %v277_v30, %v275_v15  ;;  %549 = vrcp.f32 %v298_v9  ;;  %v299_v19 = vmul.f32 %v291_v10, %v227_v21  ;;  %v285_v20 = vsel %vm283_vm15, %v284_v47, %v282_v14 }
  0x56   : > { %v292_v17 = vadd.f32 2.220446e-16, %v278_v16  ;;  %v293_v22 = vadd.f32 2.220446e-16, %v285_v20 }
  0x57   : > { %551 = vrcp.f32 %v299_v19 }
  0x58   : > { %v300_v23 = vmul.f32 %v292_v17, %v228_v11  ;;  %v301_v24 = vmul.f32 %v293_v22, %v229_v18 }
  0x5a   : > { %553 = vrcp.f32 %v300_v23 }
  0x5b   : > { %555 = vrcp.f32 %v301_v24 }
  0x5e   : > { %v542_v25 = vpop.eup %541 }
  0x5f   : > { %v544_v26 = vpop.eup %543  ;;  %v303_v27 = vmul.f32 %v542_v25, %v809_v51 }
  0x60   : > { %v546_v28 = vpop.eup %545  ;;  %v305_v29 = vmul.f32 %v544_v26, %v811_v52 }
  0x61   : > { %v318_v21 = vmul.f32 %v303_v27, %v777_v0  ;;  %v307_v30 = vmul.f32 %v546_v28, %v813_v53  ;;  %v548_v31 = vpop.eup %547 }
  0x62   : > { %v319_v32 = vmul.f32 %v305_v29, %v779_v1  ;;  %v550_v33 = vpop.eup %549  ;;  %v309_v35 = vmul.f32 %v548_v31, %v816_v57 }
  0x63   : > { %326 = vst [vmem:[%s153_s18] sm:$0xff] %v318_v21  ;;  %v320_v34 = vmul.f32 %v307_v30, %v781_v2  ;;  %v311_v51 = vmul.f32 %v550_v33, %v819_v58 }
  0x64   : > { %327 = vst [vmem:[%s153_s18 + $0x8] sm:$0xff] %v319_v32  ;;  %v552_v52 = vpop.eup %551  ;;  %v321_v0 = vmul.f32 %v309_v35, %v789_v6 }
  0x65   : > { %328 = vst [vmem:[%s153_s18 + $0x10] sm:$0xff] %v320_v34  ;;  %v322_v53 = vmul.f32 %v311_v51, %v791_v7  ;;  %v313_v1 = vmul.f32 %v552_v52, %v822_v59 }
  0x66   : > { %329 = vst [vmem:[%s153_s18 + $0x18] sm:$0xff] %v321_v0 }
  0x67   : > { %v554_v36 = vpop.eup %553  ;;  %330 = vst [vmem:[%s153_s18 + $0x20] sm:$0xff] %v322_v53  ;;  %v323_v57 = vmul.f32 %v313_v1, %v793_v8 }
  0x68   : > { %v556_v2 = vpop.eup %555  ;;  %v315_v58 = vmul.f32 %v554_v36, %v827_v62 }
  0x69   : > { %v317_v37 = vmul.f32 %v556_v2, %v829_v63  ;;  %331 = vst [vmem:[%s153_s18 + $0x28] sm:$0xff] %v323_v57 }
  0x6a   : > { %v324_v6 = vmul.f32 %v315_v58, %v801_v12 }
  0x6b   : > { %v325_v7 = vmul.f32 %v317_v37, %v803_v13 }
  0x6c   : > { %332 = vst [vmem:[%s153_s18 + $0x30] sm:$0xff] %v324_v6 }
  0x6d   : > { %333 = vst [vmem:[%s153_s18 + $0x38] sm:$0xff] %v325_v7 }
  0x6e   : > { %598 = shalt.err (!%p595_p6)
}
  0x6f   : > { %s599_s4 = scalar_lea.hbm %s936_s9, 1024  ;;  %s603_s13 = scalar_lea.hbm %s986_s1, 2048 }
  0x70   : > { %p600_p7 = scmp.ne.s32.totalorder %s936_s9, %s599_s4  ;;  %p604_p13 = scmp.lt.s32.totalorder %s936_s9, %s986_s1 }
  0x71   : > { %p605_p2 = scmp.lt.s32.totalorder %s603_s13, %s599_s4 }
  0x72   : > { %p601_p10 = pnand %p600_p7, %p734_p9 }
  0x73   : > { %p606_p8 = por %p605_p2, %p604_p13 }
  0x74   : > { %p602_p4 = pneg %p601_p10 }
  0x76   : > { %p607_p12 = pnand %p606_p8, %p602_p4 }
  0x78   : > { %610 = shalt.err (!%p607_p12)
}
  0x79   : > { %s671_s22 = smov 256   ;;  %s672_s23 = smov 16  }
  0x7a   : > { %461 = dma.vmem_to_hbm [thread:$0]  (%p734_p9), %s930_s24, 1024, %s936_s9, %s335_s28, %s671_s22, %s671_s22, %s672_s23  }
  0x7b PF: > { %s366_s18 = sand.u32 1, %s645_s6   ;;  %p992_p0 = scmp.ge.s32.totalorder %s665_s11, 2 }
  0x7c   : > { %s367_s25 = scalar_lea.sflag [#allocation4], %s366_s18 }
  0x7d   : > { %p468_p1 = pnand %p992_p0, %p741_p11 }
  0x7f   : > { %p469_p3 = pneg %p468_p1 }
  0x81   : > { %640 = dma.done.wait (%p469_p3), %s367_s25, 1024  }
  0x82   : > { %642 = vsyncadd (%p469_p3), %s367_s25, 4294966272  ;;  %s17_s11 = sadd.s32 1, %s665_s11   ;;  %s993_s6 = smov %s649_s7 }
  0x83   : > { %p14_p5 = scmp.ge.s32.totalorder %s17_s11, 4   ;;  %s994_s7 = smov %s653_s8 }
  0x84   : > { %s995_s8 = smov %s739_s20  ;;  %s996_s9 = smov %s661_s10 }
  0x85   : > { %s997_s10 = smov %s999_s14  ;;  %16 = sbr.rel (!%p14_p5) target bundleno = 6 (0x6), region = 69 }
  0x8a   :  { %372 = vsyncpa [#allocation3], 1 }
  0x8b   :  { %374 = vsyncpa [#allocation3 + $0x1], 1 }
  0x8c   :  { %375 = vsyncpa [#allocation4], 1 }
  0x8d   :  { %377 = vsyncpa [#allocation4 + $0x1], 1 }

</bundles_post_ra>
